<compile_context>
chip_gen: v7x
topology: tpu7x:2x2x1
jax: 0.10.0
libtpu: 0.0.40
codegen_flags: <defaults>
</compile_context>

<pallas_src>
import jax
import jax.numpy as jnp
from jax.experimental import pallas as pl
from jax.experimental.pallas import tpu as pltpu


def _round_up(v, m):
    return ((v + m - 1) // m) * m


# ----------------------------- Pallas kernel -------------------------------

def _m2mrf_fused_kernel(p_ref, w1_ref, b1_ref, w2_ref, b2_ref, o_ref):
    # (tm, K1) @ (K1, Fc) -> (tm, Fc); Fc is tiny, stays in vregs.
    h = jnp.dot(p_ref[...], w1_ref[...], preferred_element_type=jnp.float32)
    h = h + b1_ref[...]
    # (tm, Fc) @ (Fc, N2) -> (tm, N2); lane-dense output store.
    o = jnp.dot(h.astype(w2_ref.dtype), w2_ref[...],
                preferred_element_type=jnp.float32)
    o_ref[...] = (o + b2_ref[...]).astype(o_ref.dtype)


def fused_patch_fc(p, w1, b1, w2, b2, *, tm_max=1024,
                   vmem_tile_budget=24 * 1024 * 1024):
    """out = (p @ w1 + b1) @ w2 + b2, tiled over rows of p.

    p : (M, K1)   patch matrix, K1 = C_in*P*P  (lane-dense)
    w1: (K1, Fc)  b1: (Fc,)
    w2: (Fc, N2)  b2: (N2,)   N2 = C_out*K*K  (lane-dense)
    """
    M, K1 = p.shape
    Fc = w1.shape[1]
    N2 = w2.shape[1]
    bpe = jnp.dtype(p.dtype).itemsize
    lane, sub = 128, 8

    # Lane/sublane-padded, double-buffered VMEM footprint of the (grid-
    # resident) weights/biases.
    w_bytes = 2 * bpe * (K1 * _round_up(Fc, lane)
                         + _round_up(Fc, sub) * _round_up(N2, lane)
                         + sub * _round_up(Fc, lane)
                         + sub * _round_up(N2, lane))
    # Double-buffered input/output row tiles take the remaining budget.
    row_bytes = 2 * bpe * (_round_up(K1, lane) + _round_up(N2, lane))
    avail = max(vmem_tile_budget - w_bytes, 8 * row_bytes)
    tm = min(tm_max, avail // row_bytes)
    tm = max(8, (int(tm) // 8) * 8)
    tm = min(tm, _round_up(M, 8))        # never tile past M itself

    Mp = _round_up(M, tm)
    p_p = p if Mp == M else jnp.pad(p, ((0, Mp - M), (0, 0)))

    out = pl.pallas_call(
        _m2mrf_fused_kernel,
        out_shape=jax.ShapeDtypeStruct((Mp, N2), p.dtype),
        grid_spec=pltpu.PrefetchScalarGridSpec(
            num_scalar_prefetch=0,
            grid=(Mp // tm,),
            in_specs=[pl.BlockSpec((tm, K1), lambda i: (i, 0)),
                      pl.BlockSpec((K1, Fc), lambda i: (0, 0)),
                      pl.BlockSpec((1, Fc), lambda i: (0, 0)),
                      pl.BlockSpec((Fc, N2), lambda i: (0, 0)),
                      pl.BlockSpec((1, N2), lambda i: (0, 0))],
            out_specs=pl.BlockSpec((tm, N2), lambda i: (i, 0))),
        compiler_params=pltpu.CompilerParams(
            dimension_semantics=("parallel",),
            vmem_limit_bytes=48 * 1024 * 1024),
    )(p_p, w1, b1.reshape(1, Fc), w2, b2.reshape(1, N2))
    return out if Mp == M else out[:M]


# ------------------------------ parameters ---------------------------------

def _xavier_uniform(key, shape, fan_in, fan_out):
    bound = (6.0 / (fan_in + fan_out)) ** 0.5
    return jax.random.uniform(key, shape, minval=-bound, maxval=bound,
                              dtype=jnp.float32)


def make_m2mrf_params(key, in_channels, out_channels, scale_factor,
                      patch_size=8, encode_channels_rate=4,
                      fc_channels_rate=64):
    P = patch_size
    Ce = int(in_channels / encode_channels_rate)
    Fc = int(P * P * Ce / fc_channels_rate)
    K = int(P * scale_factor)
    fc1_out = int(P * P * scale_factor * scale_factor * Ce)  # == Ce * K * K
    ks = jax.random.split(key, 8)
    # Weights in matmul orientation (in_features, out_features); non-zero
    # biases so the bias-folding algebra below is actually exercised.
    return {
        "w_enc": _xavier_uniform(ks[0], (in_channels, Ce), in_channels, Ce),
        "b_enc": 0.1 * jax.random.normal(ks[1], (Ce,), jnp.float32),
        "w_fc": _xavier_uniform(ks[2], (P * P * Ce, Fc), P * P * Ce, Fc),
        "b_fc": 0.1 * jax.random.normal(ks[3], (Fc,), jnp.float32),
        "w_fc1": _xavier_uniform(ks[4], (Fc, fc1_out), Fc, fc1_out),
        "b_fc1": 0.1 * jax.random.normal(ks[5], (fc1_out,), jnp.float32),
        "w_dec": _xavier_uniform(ks[6], (Ce, out_channels), Ce, out_channels),
        "b_dec": 0.1 * jax.random.normal(ks[7], (out_channels,), jnp.float32),
    }


def fuse_m2mrf_params(params, patch_size, scale_factor, dtype=jnp.float32):
    """Fold the 1x1 encode/decode convs into the two patch FCs (offline).

    Pass dtype=jnp.bfloat16 to halve HBM traffic on v6e/v7x (accumulation stays
    f32 in the kernel via preferred_element_type).
    """
    P = patch_size
    C_in, Ce = params["w_enc"].shape
    Fc = params["w_fc"].shape[1]
    C_out = params["w_dec"].shape[1]
    K = int(P * scale_factor)

    w_fc = params["w_fc"].reshape(Ce, P, P, Fc)          # rows ordered (ce,kh,kw)
    w1 = jnp.einsum("ie,ehwf->ihwf", params["w_enc"], w_fc)
    w1 = w1.reshape(C_in * P * P, Fc)                    # rows ordered (ci,kh,kw)
    b1 = params["b_fc"] + jnp.einsum("e,ehwf->f", params["b_enc"], w_fc)

    w_fc1 = params["w_fc1"].reshape(Fc, Ce, K, K)        # cols ordered (ce,kh,kw)
    w2 = jnp.einsum("fekl,eo->fokl", w_fc1, params["w_dec"])
    w2 = w2.reshape(Fc, C_out * K * K)                   # cols ordered (co,kh,kw)
    b2 = jnp.einsum("ekl,eo->okl", params["b_fc1"].reshape(Ce, K, K),
                    params["w_dec"]) + params["b_dec"][:, None, None]
    b2 = b2.reshape(C_out * K * K)

    return {"w1": w1.astype(dtype), "b1": b1.astype(dtype),
            "w2": w2.astype(dtype), "b2": b2.astype(dtype)}


# ------------------------------ forward pass --------------------------------

def m2mrf_forward(x, fused, scale_factor, patch_size):
    """x: (B, C_in, H, W) NCHW. Returns (B, C_out, max(int(H*s),1), max(int(W*s),1))."""
    B, C_in, H, W = x.shape
    P = patch_size
    S = scale_factor
    K = int(P * S)                       # matches the PyTorch int() truncation
    N2 = fused["w2"].shape[1]
    C_out = N2 // (K * K)
    assert fused["w1"].shape[0] == C_in * P * P

    Hp = H + ((-H) % P)
    Wp = W + ((-W) % P)
    Hn, Wn = Hp // P, Wp // P
    out_h = max(int(H * S), 1)
    out_w = max(int(W * S), 1)

    # pad_input (zeros bottom/right) + Unfold, emitted directly from NCHW:
    # one reshape + one transpose -> rows (b,hn,wn), features (ci,kh,kw).
    xp = jnp.pad(x, ((0, 0), (0, 0), (0, Hp - H), (0, Wp - W)))
    patches = xp.reshape(B, C_in, Hn, P, Wn, P)
    patches = jnp.transpose(patches, (0, 2, 4, 1, 3, 5))      # (B,Hn,Wn,Ci,P,P)
    patches = patches.reshape(B * Hn * Wn, C_in * P * P)
    patches = patches.astype(fused["w1"].dtype)

    # Single fused Pallas kernel: encode conv + sample_fc + sample_fc1 +
    # decode conv, all folded into two weight matrices.
    y = fused_patch_fc(patches, fused["w1"], fused["b1"],
                       fused["w2"], fused["b2"])              # (B*L, C_out*K*K)

    # Fold (+ already-applied decode conv), straight back to NCHW, then crop.
    y = y.reshape(B, Hn, Wn, C_out, K, K)
    y = jnp.transpose(y, (0, 3, 1, 4, 2, 5))                  # (B,Co,Hn,K,Wn,K)
    y = y.reshape(B, C_out, Hn * K, Wn * K)
    return y[:, :, :out_h, :out_w].astype(x.dtype)


# pure-JAX reference following the ORIGINAL (unfused) module structure, used to
# validate both the kernel and the weight-folding algebra.
def m2mrf_forward_ref(x, params, scale_factor, patch_size):
    B, C_in, H, W = x.shape
    P, S = patch_size, scale_factor
    Ce = params["w_enc"].shape[1]
    C_out = params["w_dec"].shape[1]
    K = int(P * S)
    Hp = H + ((-H) % P)
    Wp = W + ((-W) % P)
    out_h = max(int(H * S), 1)
    out_w = max(int(W * S), 1)
    x = jnp.pad(x, ((0, 0), (0, 0), (0, Hp - H), (0, Wp - W)))
    x = jnp.transpose(x, (0, 2, 3, 1))
    xe = x.reshape(-1, C_in) @ params["w_enc"] + params["b_enc"]
    xe = xe.reshape(B, Hp, Wp, Ce)
    Hn, Wn = Hp // P, Wp // P
    p = jnp.transpose(xe.reshape(B, Hn, P, Wn, P, Ce), (0, 1, 3, 5, 2, 4))
    p = p.reshape(B * Hn * Wn, Ce * P * P)
    y1 = p @ params["w_fc"] + params["b_fc"]
    y2 = y1 @ params["w_fc1"] + params["b_fc1"]
    y2 = jnp.transpose(y2.reshape(B, Hn, Wn, Ce, K, K), (0, 1, 4, 2, 5, 3))
    y2 = y2.reshape(B, Hn * K, Wn * K, Ce)
    yd = y2.reshape(-1, Ce) @ params["w_dec"] + params["b_dec"]
    yd = yd.reshape(B, Hn * K, Wn * K, C_out)
    return jnp.transpose(yd, (0, 3, 1, 2))[:, :, :out_h, :out_w]


# ---------------------------------- main ------------------------------------

if __name__ == "__main__":
    key = jax.random.PRNGKey(0)
    k_param, k_x = jax.random.split(key)

    B = 2
    in_channels = 16
    out_channels = 16
    H = W = 20          # not a multiple of patch_size=8 -> exercises pad/crop
    scale_factor = 0.5  # downsampling branch
    patch_size = 8

    params = make_m2mrf_params(
        k_param, in_channels, out_channels, scale_factor, patch_size)
    fused = fuse_m2mrf_params(params, patch_size, scale_factor,
                              dtype=jnp.float32)

    x = jax.random.normal(k_x, (B, in_channels, H, W), dtype=jnp.float32)

    out = jax.block_until_ready(
        m2mrf_forward(x, fused, scale_factor, patch_size))
    ref = jax.block_until_ready(
        m2mrf_forward_ref(x, params, scale_factor, patch_size))

    expected_shape = (B, out_channels,
                      int(H * scale_factor), int(W * scale_factor))
    assert out.shape == expected_shape, (out.shape, expected_shape)
    assert jnp.allclose(out, ref, atol=1e-4, rtol=1e-4), "mismatch vs reference"

    print("KERNEL_OK")
</pallas_src>

<mosaic_0001>
module attributes {stable_mosaic.version = 11 : i64} {
  func.func @_m2mrf_fused_kernel(%arg0: i32, %arg1: memref<24x1024xf32, #tpu.memory_space<vmem>>, %arg2: memref<1024x4xf32, #tpu.memory_space<vmem>>, %arg3: memref<1x4xf32, #tpu.memory_space<vmem>>, %arg4: memref<4x256xf32, #tpu.memory_space<vmem>>, %arg5: memref<1x256xf32, #tpu.memory_space<vmem>>, %arg6: memref<24x256xf32, #tpu.memory_space<vmem>>) attributes {dimension_semantics = [#tpu.dimension_semantics<parallel>], iteration_bounds = array<i64: 1>, scalar_prefetch = 0 : i64, scratch_operands = 0 : i64, tpu.core_type = #tpu.core_type<tc>, window_params = [{transform_indices = @transform_0, window_bounds = array<i64: 24, 1024>}, {pipeline_mode = #tpu.pipeline_mode<synchronous>, transform_indices = @transform_1, window_bounds = array<i64: 1024, 4>}, {pipeline_mode = #tpu.pipeline_mode<synchronous>, transform_indices = @transform_2, window_bounds = array<i64: 1, 4>}, {pipeline_mode = #tpu.pipeline_mode<synchronous>, transform_indices = @transform_3, window_bounds = array<i64: 4, 256>}, {pipeline_mode = #tpu.pipeline_mode<synchronous>, transform_indices = @transform_4, window_bounds = array<i64: 1, 256>}, {transform_indices = @transform_5, window_bounds = array<i64: 24, 256>}]} {
    %c0 = arith.constant 0 : index
    %c0_0 = arith.constant 0 : index
    %0 = vector.load %arg1[%c0, %c0_0] : memref<24x1024xf32, #tpu.memory_space<vmem>>, vector<24x1024xf32>
    %c0_1 = arith.constant 0 : index
    %c0_2 = arith.constant 0 : index
    %1 = vector.load %arg2[%c0_1, %c0_2] : memref<1024x4xf32, #tpu.memory_space<vmem>>, vector<1024x4xf32>
    %cst = arith.constant dense<0.000000e+00> : vector<24x4xf32>
    %2 = tpu.matmul %0, %1, %cst {dimension_numbers = #tpu.dot_dimension_numbers<[1], [0], [0], [1], [0, 0, 1, 1], [], []>} : vector<24x1024xf32>, vector<1024x4xf32>, vector<24x4xf32> -> vector<24x4xf32>
    %c0_3 = arith.constant 0 : index
    %c0_4 = arith.constant 0 : index
    %3 = vector.load %arg3[%c0_3, %c0_4] : memref<1x4xf32, #tpu.memory_space<vmem>>, vector<1x4xf32>
    %4 = vector.broadcast %3 : vector<1x4xf32> to vector<24x4xf32>
    %5 = arith.addf %2, %4 : vector<24x4xf32>
    %c0_5 = arith.constant 0 : index
    %c0_6 = arith.constant 0 : index
    %6 = vector.load %arg4[%c0_5, %c0_6] : memref<4x256xf32, #tpu.memory_space<vmem>>, vector<4x256xf32>
    %cst_7 = arith.constant dense<0.000000e+00> : vector<24x256xf32>
    %7 = tpu.matmul %5, %6, %cst_7 {dimension_numbers = #tpu.dot_dimension_numbers<[1], [0], [0], [1], [0, 0, 1, 1], [], []>} : vector<24x4xf32>, vector<4x256xf32>, vector<24x256xf32> -> vector<24x256xf32>
    %c0_8 = arith.constant 0 : index
    %c0_9 = arith.constant 0 : index
    %8 = vector.load %arg5[%c0_8, %c0_9] : memref<1x256xf32, #tpu.memory_space<vmem>>, vector<1x256xf32>
    %9 = vector.broadcast %8 : vector<1x256xf32> to vector<24x256xf32>
    %10 = arith.addf %7, %9 : vector<24x256xf32>
    %c0_10 = arith.constant 0 : index
    %c0_11 = arith.constant 0 : index
    %11 = vector.load %arg6[%c0_10, %c0_11] : memref<24x256xf32, #tpu.memory_space<vmem>>, vector<24x256xf32>
    tpu.vector_store %arg6[%c0_10, %c0_11], %10 {strides = array<i32>} : memref<24x256xf32, #tpu.memory_space<vmem>>, vector<24x256xf32>,
    return
  }
  func.func @transform_0(%arg0: i32) -> (i32, i32) {
    %c0_i32 = arith.constant 0 : i32
    %c0_i32_0 = arith.constant 0 : i32
    return %arg0, %c0_i32 : i32, i32
  }
  func.func @transform_1(%arg0: i32) -> (i32, i32) {
    %c0_i32 = arith.constant 0 : i32
    %c0_i32_0 = arith.constant 0 : i32
    %c0_i32_1 = arith.constant 0 : i32
    return %c0_i32, %c0_i32_0 : i32, i32
  }
  func.func @transform_2(%arg0: i32) -> (i32, i32) {
    %c0_i32 = arith.constant 0 : i32
    %c0_i32_0 = arith.constant 0 : i32
    %c0_i32_1 = arith.constant 0 : i32
    return %c0_i32, %c0_i32_0 : i32, i32
  }
  func.func @transform_3(%arg0: i32) -> (i32, i32) {
    %c0_i32 = arith.constant 0 : i32
    %c0_i32_0 = arith.constant 0 : i32
    %c0_i32_1 = arith.constant 0 : i32
    return %c0_i32, %c0_i32_0 : i32, i32
  }
  func.func @transform_4(%arg0: i32) -> (i32, i32) {
    %c0_i32 = arith.constant 0 : i32
    %c0_i32_0 = arith.constant 0 : i32
    %c0_i32_1 = arith.constant 0 : i32
    return %c0_i32, %c0_i32_0 : i32, i32
  }
  func.func @transform_5(%arg0: i32) -> (i32, i32) {
    %c0_i32 = arith.constant 0 : i32
    %c0_i32_0 = arith.constant 0 : i32
    return %arg0, %c0_i32 : i32, i32
  }
}

</mosaic_0001>

<bundles_post_ra>
// kernel: tpu_custom_call.1
= control target key start
LH: loop header
LB: loop body
LE: loop exit
PB: predicated region body
PF: predicated region fallthrough
CT: control target
= control target key end

     0   :  { %s1478_s0 = inlined_call_operand.vmem [shape: f32[24,1024], index: 0, kind: input, shape index: {}]   ;;  %s1479_s1 = inlined_call_operand.vmem [shape: f32[1024,4], index: 1, kind: input, shape index: {}]   ;;  %s1480_s2 = inlined_call_operand.vmem [shape: f32[1,4], index: 2, kind: input, shape index: {}]   ;;  %s1481_s3 = inlined_call_operand.vmem [shape: f32[4,256], index: 3, kind: input, shape index: {}]   ;;  %s1482_s4 = inlined_call_operand.vmem [shape: f32[1,256], index: 4, kind: input, shape index: {}]   ;;  %s1483_s5 = inlined_call_operand.hbm [shape: f32[24,256], index: 5, kind: output, shape index: {}]  }
   0x1   :  { %v61_v0 = vld [vmem:[%s1479_s1 + $0x80] sm:$0xff]  ;;  %v62_v1 = vld [vmem:[%s1479_s1 + $0x88] sm:$0xff]  ;;  %v63_v11 = vld [vmem:[%s1479_s1 + $0x90] sm:$0xff] }
   0x2   :  { %v45_v2 = vld [vmem:[%s1479_s1] sm:$0xff]  ;;  %v805_v3 = vpack.c.bf16 %v62_v1, %v61_v0  ;;  %v46_v4 = vld [vmem:[%s1479_s1 + $0x8] sm:$0xff]  ;;  %v64_v13 = vld [vmem:[%s1479_s1 + $0x98] sm:$0xff] }
   0x3   :  { %v93_v5 = vld [vmem:[%s1479_s1 + $0x180] sm:$0xff]  ;;  %v94_v6 = vld [vmem:[%s1479_s1 + $0x188] sm:$0xff]  ;;  %v807_v7 = vpack.c.bf16 %v46_v4, %v45_v2  ;;  %v47_v14 = vld [vmem:[%s1479_s1 + $0x10] sm:$0xff]  ;;  %v809_v16 = vpack.c.bf16 %v64_v13, %v63_v11 }
   0x4   :  { %v837_v8 = vpack.c.bf16 %v94_v6, %v93_v5  ;;  %v77_v9 = vld [vmem:[%s1479_s1 + $0x100] sm:$0xff]  ;;  %v78_v10 = vld [vmem:[%s1479_s1 + $0x108] sm:$0xff]  ;;  %806 = vmatprep.subr.bf16.mxu0 %v805_v3  ;;  %v48_v15 = vld [vmem:[%s1479_s1 + $0x18] sm:$0xff] }
   0x5   :  { %v839_v12 = vpack.c.bf16 %v78_v10, %v77_v9  ;;  %808 = vmatpush3.bf16.msra.mxu0 %v807_v7  ;;  %v811_v17 = vpack.c.bf16 %v48_v15, %v47_v14  ;;  %v95_v18 = vld [vmem:[%s1479_s1 + $0x190] sm:$0xff]  ;;  %v96_v19 = vld [vmem:[%s1479_s1 + $0x198] sm:$0xff]  ;;  %v65_v23 = vld [vmem:[%s1479_s1 + $0xa0] sm:$0xff] }
   0x6   :  { %838 = vmatprep.subr.bf16.mxu1 %v837_v8  ;;  %v79_v20 = vld [vmem:[%s1479_s1 + $0x110] sm:$0xff]  ;;  %v841_v21 = vpack.c.bf16 %v96_v19, %v95_v18  ;;  %v80_v22 = vld [vmem:[%s1479_s1 + $0x118] sm:$0xff]  ;;  %v66_v24 = vld [vmem:[%s1479_s1 + $0xa8] sm:$0xff]  ;;  %810 = vmatprep.subr.bf16.mxu0 %v809_v16 }
   0x7   :  { %840 = vmatpush3.bf16.msra.mxu1 %v839_v12  ;;  %v843_v25 = vpack.c.bf16 %v80_v22, %v79_v20  ;;  %v813_v26 = vpack.c.bf16 %v66_v24, %v65_v23  ;;  %v49_v27 = vld [vmem:[%s1479_s1 + $0x20] sm:$0xff]  ;;  %v50_v28 = vld [vmem:[%s1479_s1 + $0x28] sm:$0xff]  ;;  %v67_v35 = vld [vmem:[%s1479_s1 + $0xb0] sm:$0xff] }
   0x8   :  { %v97_v29 = vld [vmem:[%s1479_s1 + $0x1a0] sm:$0xff]  ;;  %842 = vmatprep.subr.bf16.mxu1 %v841_v21  ;;  %v98_v30 = vld [vmem:[%s1479_s1 + $0x1a8] sm:$0xff]  ;;  %v815_v33 = vpack.c.bf16 %v50_v28, %v49_v27  ;;  %v68_v36 = vld [vmem:[%s1479_s1 + $0xb8] sm:$0xff] }
   0x9   :  { %v81_v31 = vld [vmem:[%s1479_s1 + $0x120] sm:$0xff]  ;;  %v82_v32 = vld [vmem:[%s1479_s1 + $0x128] sm:$0xff]  ;;  %812 = vmatpush3.bf16.msra.mxu0 %v811_v17  ;;  %v845_v34 = vpack.c.bf16 %v98_v30, %v97_v29  ;;  %v51_v37 = vld [vmem:[%s1479_s1 + $0x30] sm:$0xff]  ;;  %v817_v39 = vpack.c.bf16 %v68_v36, %v67_v35 }
   0xa   :  { %814 = vmatprep.subr.bf16.mxu0 %v813_v26  ;;  %v847_v38 = vpack.c.bf16 %v82_v32, %v81_v31  ;;  %v52_v40 = vld [vmem:[%s1479_s1 + $0x38] sm:$0xff]  ;;  %v99_v41 = vld [vmem:[%s1479_s1 + $0x1b0] sm:$0xff]  ;;  %v69_v46 = vld [vmem:[%s1479_s1 + $0xc0] sm:$0xff] }
   0xb   :  { %844 = vmatpush3.bf16.msra.mxu1 %v843_v25  ;;  %v100_v42 = vld [vmem:[%s1479_s1 + $0x1b8] sm:$0xff]  ;;  %v83_v44 = vld [vmem:[%s1479_s1 + $0x130] sm:$0xff]  ;;  %v70_v47 = vld [vmem:[%s1479_s1 + $0xc8] sm:$0xff]  ;;  %v819_v48 = vpack.c.bf16 %v52_v40, %v51_v37 }
   0xc   :  { %846 = vmatprep.subr.bf16.mxu1 %v845_v34  ;;  %v849_v43 = vpack.c.bf16 %v100_v42, %v99_v41  ;;  %v84_v45 = vld [vmem:[%s1479_s1 + $0x138] sm:$0xff]  ;;  %v101_v49 = vld [vmem:[%s1479_s1 + $0x1c0] sm:$0xff]  ;;  %v102_v50 = vld [vmem:[%s1479_s1 + $0x1c8] sm:$0xff]  ;;  %v821_v52 = vpack.c.bf16 %v70_v47, %v69_v46 }
   0xd   :  { %816 = vmatpush3.bf16.msra.mxu0 %v815_v33  ;;  %v851_v51 = vpack.c.bf16 %v84_v45, %v83_v44  ;;  %v53_v53 = vld [vmem:[%s1479_s1 + $0x40] sm:$0xff]  ;;  %v54_v54 = vld [vmem:[%s1479_s1 + $0x48] sm:$0xff]  ;;  %v853_v56 = vpack.c.bf16 %v102_v50, %v101_v49  ;;  %v71_v58 = vld [vmem:[%s1479_s1 + $0xd0] sm:$0xff] }
   0xe   :  { %818 = vmatprep.subr.bf16.mxu0 %v817_v39  ;;  %v85_v55 = vld [vmem:[%s1479_s1 + $0x140] sm:$0xff]  ;;  %v86_v57 = vld [vmem:[%s1479_s1 + $0x148] sm:$0xff]  ;;  %v72_v59 = vld [vmem:[%s1479_s1 + $0xd8] sm:$0xff]  ;;  %v823_v62 = vpack.c.bf16 %v54_v54, %v53_v53 }
   0xf   :  { %848 = vmatpush3.bf16.msra.mxu1 %v847_v38  ;;  %v103_v60 = vld [vmem:[%s1479_s1 + $0x1d0] sm:$0xff]  ;;  %v104_v61 = vld [vmem:[%s1479_s1 + $0x1d8] sm:$0xff]  ;;  %v855_v63 = vpack.c.bf16 %v86_v57, %v85_v55  ;;  %v825_v0 = vpack.c.bf16 %v72_v59, %v71_v58  ;;  %v73_v6 = vld [vmem:[%s1479_s1 + $0xe0] sm:$0xff] }
  0x10   :  { %850 = vmatprep.subr.bf16.mxu1 %v849_v43  ;;  %v55_v1 = vld [vmem:[%s1479_s1 + $0x50] sm:$0xff]  ;;  %v56_v2 = vld [vmem:[%s1479_s1 + $0x58] sm:$0xff]  ;;  %v857_v4 = vpack.c.bf16 %v104_v61, %v103_v60  ;;  %v74_v7 = vld [vmem:[%s1479_s1 + $0xe8] sm:$0xff] }
  0x11   :  { %820 = vmatpush3.bf16.msra.mxu0 %v819_v48  ;;  %v87_v3 = vld [vmem:[%s1479_s1 + $0x150] sm:$0xff]  ;;  %v88_v5 = vld [vmem:[%s1479_s1 + $0x158] sm:$0xff]  ;;  %v105_v8 = vld [vmem:[%s1479_s1 + $0x1e0] sm:$0xff]  ;;  %v827_v10 = vpack.c.bf16 %v56_v2, %v55_v1  ;;  %v829_v14 = vpack.c.bf16 %v74_v7, %v73_v6 }
  0x12   :  { %822 = vmatprep.subr.bf16.mxu0 %v821_v52  ;;  %v106_v9 = vld [vmem:[%s1479_s1 + $0x1e8] sm:$0xff]  ;;  %v57_v11 = vld [vmem:[%s1479_s1 + $0x60] sm:$0xff]  ;;  %v859_v13 = vpack.c.bf16 %v88_v5, %v87_v3  ;;  %v75_v19 = vld [vmem:[%s1479_s1 + $0xf0] sm:$0xff] }
  0x13   :  { %852 = vmatpush3.bf16.msra.mxu1 %v851_v51  ;;  %v58_v12 = vld [vmem:[%s1479_s1 + $0x68] sm:$0xff]  ;;  %v89_v15 = vld [vmem:[%s1479_s1 + $0x160] sm:$0xff]  ;;  %v861_v18 = vpack.c.bf16 %v106_v9, %v105_v8  ;;  %v76_v20 = vld [vmem:[%s1479_s1 + $0xf8] sm:$0xff] }
  0x14   :  { %854 = vmatprep.subr.bf16.mxu1 %v853_v56  ;;  %v90_v16 = vld [vmem:[%s1479_s1 + $0x168] sm:$0xff]  ;;  %v24_v21 = vld [vmem:[%s1478_s0 + $0x18] sm:$0xff]  ;;  %v107_v22 = vld [vmem:[%s1479_s1 + $0x1f0] sm:$0xff]  ;;  %v831_v24 = vpack.c.bf16 %v58_v12, %v57_v11  ;;  %v833_v26 = vpack.c.bf16 %v76_v20, %v75_v19 }
  0x15   :  { %824 = vmatpush3.bf16.msra.mxu0 %v823_v62  ;;  %v22_v17 = vld [vmem:[%s1478_s0 + $0x8] sm:$0xff]  ;;  %v108_v23 = vld [vmem:[%s1479_s1 + $0x1f8] sm:$0xff]  ;;  %324 = vmatprep.mubr.f32.mxu1 %v24_v21  ;;  %v863_v25 = vpack.c.bf16 %v90_v16, %v89_v15  ;;  %v59_v27 = vld [vmem:[%s1479_s1 + $0x70] sm:$0xff] }
  0x16   :  { %826 = vmatprep.subr.bf16.mxu0 %v825_v0  ;;  %244 = vmatprep.mubr.f32.mxu0 %v22_v17  ;;  %v60_v28 = vld [vmem:[%s1479_s1 + $0x78] sm:$0xff]  ;;  %v91_v29 = vld [vmem:[%s1479_s1 + $0x170] sm:$0xff]  ;;  %v865_v30 = vpack.c.bf16 %v108_v23, %v107_v22  ;;  %v125_v32 = vld [vmem:[%s1479_s1 + $0x280] sm:$0xff] }
  0x17   :  { %856 = vmatpush3.bf16.msra.mxu1 %v855_v63  ;;  %v92_v31 = vld [vmem:[%s1479_s1 + $0x178] sm:$0xff]  ;;  %v126_v33 = vld [vmem:[%s1479_s1 + $0x288] sm:$0xff]  ;;  %v157_v34 = vld [vmem:[%s1479_s1 + $0x380] sm:$0xff]  ;;  %v835_v36 = vpack.c.bf16 %v60_v28, %v59_v27 }
  0x18   :  { %858 = vmatprep.subr.bf16.mxu1 %v857_v4  ;;  %v158_v35 = vld [vmem:[%s1479_s1 + $0x388] sm:$0xff]  ;;  %v867_v37 = vpack.c.bf16 %v92_v31, %v91_v29  ;;  %v869_v38 = vpack.c.bf16 %v126_v33, %v125_v32  ;;  %v109_v39 = vld [vmem:[%s1479_s1 + $0x200] sm:$0xff]  ;;  %v127_v44 = vld [vmem:[%s1479_s1 + $0x290] sm:$0xff] }
  0x19   :  { %828 = vmatpush3.bf16.msra.mxu0 %v827_v10  ;;  %v110_v40 = vld [vmem:[%s1479_s1 + $0x208] sm:$0xff]  ;;  %v141_v41 = vld [vmem:[%s1479_s1 + $0x300] sm:$0xff]  ;;  %v901_v42 = vpack.c.bf16 %v158_v35, %v157_v34  ;;  %v128_v45 = vld [vmem:[%s1479_s1 + $0x298] sm:$0xff] }
  0x1a   :  { %830 = vmatprep.subr.bf16.mxu0 %v829_v14  ;;  %v142_v43 = vld [vmem:[%s1479_s1 + $0x308] sm:$0xff]  ;;  %v159_v46 = vld [vmem:[%s1479_s1 + $0x390] sm:$0xff]  ;;  %v160_v47 = vld [vmem:[%s1479_s1 + $0x398] sm:$0xff]  ;;  %v871_v49 = vpack.c.bf16 %v110_v40, %v109_v39  ;;  %v873_v52 = vpack.c.bf16 %v128_v45, %v127_v44 }
  0x1b   :  { %860 = vmatpush3.bf16.msra.mxu1 %v859_v13  ;;  %v21_v48 = vld [vmem:[%s1478_s0] sm:$0xff]  ;;  %v23_v50 = vld [vmem:[%s1478_s0 + $0x10] sm:$0xff]  ;;  %v903_v51 = vpack.c.bf16 %v142_v43, %v141_v41  ;;  %v112_v54 = vld [vmem:[%s1479_s1 + $0x218] sm:$0xff]  ;;  %v905_v56 = vpack.c.bf16 %v160_v47, %v159_v46 }
  0x1c   :  { %862 = vmatprep.subr.bf16.mxu1 %v861_v18  ;;  %v111_v53 = vld [vmem:[%s1479_s1 + $0x210] sm:$0xff]  ;;  %v144_v57 = vld [vmem:[%s1479_s1 + $0x318] sm:$0xff]  ;;  %v129_v58 = vld [vmem:[%s1479_s1 + $0x2a0] sm:$0xff] }
  0x1d   :  { %832 = vmatpush3.bf16.msra.mxu0 %v831_v24  ;;  %v143_v55 = vld [vmem:[%s1479_s1 + $0x310] sm:$0xff]  ;;  %v130_v59 = vld [vmem:[%s1479_s1 + $0x2a8] sm:$0xff]  ;;  %v161_v60 = vld [vmem:[%s1479_s1 + $0x3a0] sm:$0xff]  ;;  %v875_v62 = vpack.c.bf16 %v112_v54, %v111_v53 }
  0x1e   :  { %834 = vmatprep.subr.bf16.mxu0 %v833_v26  ;;  %v162_v61 = vld [vmem:[%s1479_s1 + $0x3a8] sm:$0xff]  ;;  %v113_v63 = vld [vmem:[%s1479_s1 + $0x220] sm:$0xff]  ;;  %v907_v1 = vpack.c.bf16 %v144_v57, %v143_v55  ;;  %v877_v2 = vpack.c.bf16 %v130_v59, %v129_v58  ;;  %v131_v5 = vld [vmem:[%s1479_s1 + $0x2b0] sm:$0xff] }
  0x1f   :  { %864 = vmatpush3.bf16.msra.mxu1 %v863_v25  ;;  %v114_v0 = vld [vmem:[%s1479_s1 + $0x228] sm:$0xff]  ;;  %v145_v3 = vld [vmem:[%s1479_s1 + $0x320] sm:$0xff]  ;;  %v909_v6 = vpack.c.bf16 %v162_v61, %v161_v60  ;;  %v132_v7 = vld [vmem:[%s1479_s1 + $0x2b8] sm:$0xff] }
  0x20   :  { %866 = vmatprep.subr.bf16.mxu1 %v865_v30  ;;  %v146_v4 = vld [vmem:[%s1479_s1 + $0x328] sm:$0xff]  ;;  %v163_v8 = vld [vmem:[%s1479_s1 + $0x3b0] sm:$0xff]  ;;  %v164_v10 = vld [vmem:[%s1479_s1 + $0x3b8] sm:$0xff]  ;;  %v879_v13 = vpack.c.bf16 %v114_v0, %v113_v63  ;;  %v881_v18 = vpack.c.bf16 %v132_v7, %v131_v5 }
  0x21   :  { %836 = vmatpush3.bf16.msra.mxu0 %v835_v36  ;;  %v30_v9 = vld [vmem:[%s1478_s0 + $0x48] sm:$0xff]  ;;  %v29_v11 = vld [vmem:[%s1478_s0 + $0x40] sm:$0xff]  ;;  %v32_v12 = vld [vmem:[%s1478_s0 + $0x58] sm:$0xff]  ;;  %v911_v17 = vpack.c.bf16 %v146_v4, %v145_v3  ;;  %v913_v22 = vpack.c.bf16 %v164_v10, %v163_v8 }
  0x22   :  { %870 = vmatprep.subr.bf16.mxu0 %v869_v38  ;;  %v115_v14 = vld [vmem:[%s1479_s1 + $0x230] sm:$0xff]  ;;  %v116_v15 = vld [vmem:[%s1479_s1 + $0x238] sm:$0xff]  ;;  %v133_v21 = vld [vmem:[%s1479_s1 + $0x2c0] sm:$0xff] }
  0x23   :  { %868 = vmatpush3.bf16.msra.mxu1 %v867_v37  ;;  %v31_v16 = vld [vmem:[%s1478_s0 + $0x50] sm:$0xff]  ;;  %v148_v20 = vld [vmem:[%s1479_s1 + $0x338] sm:$0xff]  ;;  %v134_v23 = vld [vmem:[%s1479_s1 + $0x2c8] sm:$0xff]  ;;  %v883_v29 = vpack.c.bf16 %v116_v15, %v115_v14 }
  0x24   :  { %902 = vmatprep.subr.bf16.mxu1 %v901_v42  ;;  %245 = vmatmul.mubr.f32.vlgmr.msra.gmra.mrb[0].mxu0 %v21_v48  ;;  %v147_v19 = vld [vmem:[%s1479_s1 + $0x330] sm:$0xff]  ;;  %v165_v24 = vld [vmem:[%s1479_s1 + $0x3c0] sm:$0xff]  ;;  %v38_v25 = vld [vmem:[%s1478_s0 + $0x88] sm:$0xff]  ;;  %v885_v33 = vpack.c.bf16 %v134_v23, %v133_v21 }
  0x25   :  { %872 = vmatpush3.bf16.msra.mxu0 %v871_v49  ;;  %249 = vmatprep.mubr.f32.mxu0 %v30_v9  ;;  %v166_v26 = vld [vmem:[%s1479_s1 + $0x3c8] sm:$0xff]  ;;  %v37_v27 = vld [vmem:[%s1478_s0 + $0x80] sm:$0xff]  ;;  %v40_v28 = vld [vmem:[%s1478_s0 + $0x98] sm:$0xff]  ;;  %v915_v32 = vpack.c.bf16 %v148_v20, %v147_v19 }
  0x26   :  { %325 = vmatmul.mubr.f32.vlgmr.msra.gmra.mrb[0].mxu1 %v23_v50  ;;  %874 = vmatprep.subr.bf16.mxu0 %v873_v52  ;;  %v117_v30 = vld [vmem:[%s1479_s1 + $0x240] sm:$0xff]  ;;  %v39_v31 = vld [vmem:[%s1478_s0 + $0x90] sm:$0xff]  ;;  %v118_v34 = vld [vmem:[%s1479_s1 + $0x248] sm:$0xff]  ;;  %v917_v37 = vpack.c.bf16 %v166_v26, %v165_v24 }
  0x27   :  { %904 = vmatpush3.bf16.msra.mxu1 %v903_v51  ;;  %329 = vmatprep.mubr.f32.mxu1 %v32_v12  ;;  %v149_v35 = vld [vmem:[%s1479_s1 + $0x340] sm:$0xff]  ;;  %v150_v36 = vld [vmem:[%s1479_s1 + $0x348] sm:$0xff]  ;;  %v135_v38 = vld [vmem:[%s1479_s1 + $0x2d0] sm:$0xff]  ;;  %v887_v44 = vpack.c.bf16 %v118_v34, %v117_v30 }
  0x28   :  { %906 = vmatprep.subr.bf16.mxu1 %v905_v56  ;;  %250 = vmatmul.mubr.f32.gmra.mrb[2].mxu0 %v29_v11  ;;  %v136_v39 = vld [vmem:[%s1479_s1 + $0x2d8] sm:$0xff]  ;;  %v26_v40 = vld [vmem:[%s1478_s0 + $0x28] sm:$0xff]  ;;  %v167_v41 = vld [vmem:[%s1479_s1 + $0x3d0] sm:$0xff]  ;;  %v919_v46 = vpack.c.bf16 %v150_v36, %v149_v35 }
  0x29   :  { %876 = vmatpush3.bf16.msra.mxu0 %v875_v62  ;;  %254 = vmatprep.mubr.f32.mxu0 %v38_v25  ;;  %v168_v42 = vld [vmem:[%s1479_s1 + $0x3d8] sm:$0xff]  ;;  %v119_v45 = vld [vmem:[%s1479_s1 + $0x250] sm:$0xff]  ;;  %v889_v47 = vpack.c.bf16 %v136_v39, %v135_v38  ;;  %v137_v52 = vld [vmem:[%s1479_s1 + $0x2e0] sm:$0xff] }
  0x2a   :  { %878 = vmatprep.subr.bf16.mxu0 %v877_v2  ;;  %330 = vmatmul.mubr.f32.gmra.mrb[2].mxu1 %v31_v16  ;;  %v28_v43 = vld [vmem:[%s1478_s0 + $0x38] sm:$0xff]  ;;  %v151_v49 = vld [vmem:[%s1479_s1 + $0x350] sm:$0xff]  ;;  %v921_v51 = vpack.c.bf16 %v168_v42, %v167_v41  ;;  %v138_v53 = vld [vmem:[%s1479_s1 + $0x2e8] sm:$0xff] }
  0x2b   :  { %908 = vmatpush3.bf16.msra.mxu1 %v907_v1  ;;  %334 = vmatprep.mubr.f32.mxu1 %v40_v28  ;;  %v120_v48 = vld [vmem:[%s1479_s1 + $0x258] sm:$0xff] }
  0x2c   :  { %910 = vmatprep.subr.bf16.mxu1 %v909_v6  ;;  %255 = vmatmul.mubr.f32.gmra.mrb[4].mxu0 %v37_v27  ;;  %v152_v50 = vld [vmem:[%s1479_s1 + $0x358] sm:$0xff] }
  0x2d   :  { %880 = vmatpush3.bf16.msra.mxu0 %v879_v13  ;;  %404 = vmatprep.mubr.f32.mxu0 %v26_v40 }
  0x2e   :  { %882 = vmatprep.subr.bf16.mxu0 %v881_v18  ;;  %335 = vmatmul.mubr.f32.gmra.mrb[4].mxu1 %v39_v31 }
  0x2f   :  { %912 = vmatpush3.bf16.msra.mxu1 %v911_v17  ;;  %484 = vmatprep.mubr.f32.mxu1 %v28_v43 }
  0x30   :  { %914 = vmatprep.subr.bf16.mxu1 %v913_v22 }
  0x31   :  { %884 = vmatpush3.bf16.msra.mxu0 %v883_v29 }
  0x32   :  { %886 = vmatprep.subr.bf16.mxu0 %v885_v33 }
  0x33   :  { %916 = vmatpush3.bf16.msra.mxu1 %v915_v32 }
  0x34   :  { %918 = vmatprep.subr.bf16.mxu1 %v917_v37 }
  0x35   :  { %10 = vsyncpa [#allocation3], 0  ;;  %v169_v54 = vld [vmem:[%s1479_s1 + $0x3e0] sm:$0xff]  ;;  %v170_v55 = vld [vmem:[%s1479_s1 + $0x3e8] sm:$0xff]  ;;  %888 = vmatpush3.bf16.msra.mxu0 %v887_v44  ;;  %v891_v56 = vpack.c.bf16 %v120_v48, %v119_v45  ;;  %v923_v57 = vpack.c.bf16 %v152_v50, %v151_v49  ;;  %v893_v58 = vpack.c.bf16 %v138_v53, %v137_v52  ;;  %vm525_vm0 = vcmask 1043456  }
  0x36   :  { %890 = vmatprep.subr.bf16.mxu0 %v889_v47  ;;  %v121_v59 = vld [vmem:[%s1479_s1 + $0x260] sm:$0xff]  ;;  %v122_v60 = vld [vmem:[%s1479_s1 + $0x268] sm:$0xff]  ;;  %v925_v62 = vpack.c.bf16 %v170_v55, %v169_v54  ;;  %v139_v0 = vld [vmem:[%s1479_s1 + $0x2f0] sm:$0xff]  ;;  %v964_v26 = vmov 0.0   ;;  %vm515_vm1 = vcmask 31744  }
  0x37   :  { %920 = vmatpush3.bf16.msra.mxu1 %v919_v46  ;;  %v153_v61 = vld [vmem:[%s1479_s1 + $0x360] sm:$0xff]  ;;  %v154_v63 = vld [vmem:[%s1479_s1 + $0x368] sm:$0xff]  ;;  %v140_v1 = vld [vmem:[%s1479_s1 + $0x2f8] sm:$0xff]  ;;  %v895_v4 = vpack.c.bf16 %v122_v60, %v121_v59 }
  0x38   :  { %922 = vmatprep.subr.bf16.mxu1 %v921_v51  ;;  %v171_v2 = vld [vmem:[%s1479_s1 + $0x3f0] sm:$0xff]  ;;  %v172_v3 = vld [vmem:[%s1479_s1 + $0x3f8] sm:$0xff]  ;;  %v927_v5 = vpack.c.bf16 %v154_v63, %v153_v61  ;;  %v897_v6 = vpack.c.bf16 %v140_v1, %v139_v0  ;;  %v25_v14 = vld [vmem:[%s1478_s0 + $0x20] sm:$0xff] }
  0x39   :  { %892 = vmatpush3.bf16.msra.mxu0 %v891_v56  ;;  %v123_v7 = vld [vmem:[%s1479_s1 + $0x270] sm:$0xff]  ;;  %v124_v8 = vld [vmem:[%s1479_s1 + $0x278] sm:$0xff]  ;;  %v929_v9 = vpack.c.bf16 %v172_v3, %v171_v2  ;;  %v34_v16 = vld [vmem:[%s1478_s0 + $0x68] sm:$0xff] }
  0x3a   :  { %894 = vmatprep.subr.bf16.mxu0 %v893_v58  ;;  %v155_v10 = vld [vmem:[%s1479_s1 + $0x370] sm:$0xff]  ;;  %v156_v11 = vld [vmem:[%s1479_s1 + $0x378] sm:$0xff]  ;;  %v899_v12 = vpack.c.bf16 %v124_v8, %v123_v7  ;;  %v33_v18 = vld [vmem:[%s1478_s0 + $0x60] sm:$0xff] }
  0x3b   :  { %924 = vmatpush3.bf16.msra.mxu1 %v923_v57  ;;  %v931_v13 = vpack.c.bf16 %v156_v11, %v155_v10  ;;  %v27_v15 = vld [vmem:[%s1478_s0 + $0x30] sm:$0xff]  ;;  %v36_v17 = vld [vmem:[%s1478_s0 + $0x78] sm:$0xff]  ;;  %v42_v20 = vld [vmem:[%s1478_s0 + $0xa8] sm:$0xff] }
  0x3c   :  { %926 = vmatprep.subr.bf16.mxu1 %v925_v62  ;;  %v35_v19 = vld [vmem:[%s1478_s0 + $0x70] sm:$0xff]  ;;  %v44_v21 = vld [vmem:[%s1478_s0 + $0xb8] sm:$0xff]  ;;  %v41_v22 = vld [vmem:[%s1478_s0 + $0xa0] sm:$0xff] }
  0x3d   :  { %896 = vmatpush3.bf16.msra.mxu0 %v895_v4  ;;  %v43_v23 = vld [vmem:[%s1478_s0 + $0xb0] sm:$0xff]  ;;  %v500_v24 = vld [vmem:[%s1481_s3] sm:$0xff]  ;;  %s965_s3 = smov [#allocation2]  }
  0x3e   :  { %898 = vmatprep.subr.bf16.mxu0 %v897_v6  ;;  %v514_v25 = vcombine.high %v500_v24, %v500_v24  ;;  %v635_v28 = vld [vmem:[%s1480_s2] ss:$0 sm:$0xff]  ;;  %s624_s25 = sshll.u32 %s965_s3, 4  ;;  %s625_s25 = int_to_ptr.vmem [resolvable:$true] %s624_s25 }
  0x3f   :  { %928 = vmatpush3.bf16.msra.mxu1 %v927_v5  ;;  %p945_p1 = scmp.lt.s32.totalorder %s625_s25, %s625_s25 }
  0x40   :  { %930 = vmatprep.subr.bf16.mxu1 %v929_v9 }
  0x41   :  { %900 = vmatpush3.bf16.msra.mxu0 %v899_v12  ;;  %v503_v12 = vlaneseq }
  0x42   :  { %636 = vmatprep.subr.msk.mxu0 %vm525_vm0, %v514_v25 }
  0x43   :  { %932 = vmatpush3.bf16.msra.mxu1 %v931_v13  ;;  %v504_v13 = vshrl.u32 %v503_v12, 7 }
  0x44   :  { %405 = vmatmul.mubr.f32.vlgmr.msra.gmra.mrb[6].mxu0 %v25_v14  ;;  %933 = vmatprep.subr.msk.mxu1 %vm525_vm0, %v514_v25 }
  0x45   :  { %409 = vmatprep.mubr.f32.mxu0 %v34_v16  ;;  %637 = vmatpush1.msk.msra.mxu0 %vm525_vm0, %v500_v24  ;;  %v505_v14 = vsub.s32 0, %v504_v13  ;;  %v509_v16 = vsub.s32 1, %v504_v13 }
  0x46   :  { %485 = vmatmul.mubr.f32.vlgmr.msra.gmra.mrb[6].mxu1 %v27_v15  ;;  %v501_v15 = vld [vmem:[%s1482_s4] sm:$0x3]  ;;  %s940_s4 = scalar_lea.vmem %s625_s25, 768 }
  0x47   :  { %489 = vmatprep.mubr.f32.mxu1 %v36_v17  ;;  %934 = vmatpush1.msk.msra.mxu1 %vm525_vm0, %v500_v24  ;;  %v506_v17 = vrot.slane %v501_v15, %v505_v14  ;;  %p941_p0 = scmp.ne.s32.totalorder %s625_s25, %s940_s4  ;;  %p946_p2 = scmp.lt.s32.totalorder %s940_s4, %s940_s4 }
  0x48   :  { %410 = vmatmul.mubr.f32.gmra.mrb[8].mxu0 %v33_v18  ;;  %v510_v18 = vrot.slane %v501_v15, %v509_v16 }
  0x49   :  { %414 = vmatprep.mubr.f32.mxu0 %v42_v20  ;;  %p947_p3 = por %p946_p2, %p945_p1 }
  0x4a   :  { %490 = vmatmul.mubr.f32.gmra.mrb[8].mxu1 %v35_v19 }
  0x4b   :  { %494 = vmatprep.mubr.f32.mxu1 %v44_v21  ;;  %p948_p4 = pnand %p947_p3, %p941_p0 }
  0x4c   :  { %415 = vmatmul.mubr.f32.gmra.mrb[10].mxu0 %v41_v22 }
  0x4d   :  { %594 = vmatprep.mubr.f32.mxu0 %v964_v26 }
  0x4e   :  { %495 = vmatmul.mubr.f32.gmra.mrb[10].mxu1 %v43_v23 }
  0x4f   :  { %600 = vmatprep.mubr.f32.mxu1 %v964_v26 }
  0xf7   :  { %v673_v27 = vpop.f32.mrb[0].mxu0 }
  0xf8   :  { %v674_v29 = vpop.f32.mrb[1].mxu0 }
  0xf9   :  { %v714_v30 = vpop.f32.mrb[0].mxu1  ;;  %v675_v31 = vadd.f32 %v674_v29, %v673_v27 }
  0xfa   :  { %v715_v32 = vpop.f32.mrb[1].mxu1 }
  0xfb   :  { %v716_v33 = vadd.f32 %v715_v32, %v714_v30  ;;  %v247_v34 = vadd.f32 %v675_v31, %v635_v28  ;;  %v676_v36 = vpop.f32.mrb[2].mxu0 }
  0xfc   :  { %v677_v37 = vpop.f32.mrb[3].mxu0 }
  0xfd   :  { %v327_v35 = vadd.f32 %v716_v33, %v247_v34  ;;  %v717_v38 = vpop.f32.mrb[2].mxu1  ;;  %v678_v39 = vadd.f32 %v677_v37, %v676_v36 }
  0xfe   :  { %v718_v40 = vpop.f32.mrb[3].mxu1 }
  0xff   :  { %v719_v41 = vadd.f32 %v718_v40, %v717_v38  ;;  %v252_v42 = vadd.f32 %v678_v39, %v635_v28  ;;  %v679_v43 = vpop.f32.mrb[4].mxu0 }
 0x100   :  { %v680_v44 = vpop.f32.mrb[5].mxu0 }
 0x101   :  { %v720_v45 = vpop.f32.mrb[4].mxu1  ;;  %v332_v46 = vadd.f32 %v719_v41, %v252_v42  ;;  %v681_v47 = vadd.f32 %v680_v44, %v679_v43 }
 0x102   :  { %v721_v48 = vpop.f32.mrb[5].mxu1 }
 0x103   :  { %v722_v49 = vadd.f32 %v721_v48, %v720_v45  ;;  %v257_v50 = vadd.f32 %v681_v47, %v635_v28 }
 0x105   :  { %v337_v51 = vadd.f32 %v722_v49, %v257_v50 }
 0x117   :  { %v755_v52 = vpop.f32.mrb[6].mxu0 }
 0x118   :  { %v756_v53 = vpop.f32.mrb[7].mxu0 }
 0x119   :  { %v796_v54 = vpop.f32.mrb[6].mxu1  ;;  %v757_v55 = vadd.f32 %v756_v53, %v755_v52 }
 0x11a   :  { %v797_v56 = vpop.f32.mrb[7].mxu1 }
 0x11b   :  { %v798_v57 = vadd.f32 %v797_v56, %v796_v54  ;;  %v407_v58 = vadd.f32 %v757_v55, %v327_v35  ;;  %v758_v59 = vpop.f32.mrb[8].mxu0 }
 0x11c   :  { %v759_v60 = vpop.f32.mrb[9].mxu0 }
 0x11d   :  { %v799_v61 = vpop.f32.mrb[8].mxu1  ;;  %v487_v62 = vadd.f32 %v798_v57, %v407_v58  ;;  %v760_v63 = vadd.f32 %v759_v60, %v758_v59 }
 0x11e   :  { %v800_v0 = vpop.f32.mrb[9].mxu1 }
 0x11f   :  { %v801_v1 = vadd.f32 %v800_v0, %v799_v61  ;;  %v412_v2 = vadd.f32 %v760_v63, %v332_v46  ;;  %v761_v3 = vpop.f32.mrb[10].mxu0  ;;  %638 = vmatmul.mubr.msk.f32.vlgmr.msra.gmra.mrb[12].mxu0 %vm515_vm1, %v487_v62 }
 0x120   :  { %v762_v4 = vpop.f32.mrb[11].mxu0 }
 0x121   :  { %v802_v5 = vpop.f32.mrb[10].mxu1  ;;  %v492_v6 = vadd.f32 %v801_v1, %v412_v2  ;;  %v763_v7 = vadd.f32 %v762_v4, %v761_v3 }
 0x122   :  { %v803_v8 = vpop.f32.mrb[11].mxu1 }
 0x123   :  { %v804_v9 = vadd.f32 %v803_v8, %v802_v5  ;;  %v417_v10 = vadd.f32 %v763_v7, %v337_v51  ;;  %639 = vmatmul.mubr.msk.f32.vlgmr.msra.gmra.mrb[12].mxu1 %vm515_vm1, %v492_v6 }
 0x124   :  { %606 = vmatprep.mubr.f32.mxu1 %v964_v26 }
 0x125   :  { %v497_v11 = vadd.f32 %v804_v9, %v417_v10 }
 0x127   :  { %640 = vmatmul.mubr.msk.f32.gmra.mrb[14].mxu1 %vm515_vm1, %v497_v11 }
 0x1f2   :  { %v596_v19 = vpop.f32.mrb[12].mxu0 }
 0x1f3   :  { %v597_v20 = vadd.f32 %v596_v19, %v506_v17  ;;  %v598_v21 = vpop.f32.mrb[13].mxu0 }
 0x1f4   :  { %v599_v22 = vadd.f32 %v598_v21, %v510_v18 }
 0x1f5   :  { %613 = vst [vmem:[#allocation2] sm:$0xff] %v597_v20 }
 0x1f6   :  { %614 = vst [vmem:[#allocation2 + $0x8] sm:$0xff] %v599_v22  ;;  %v602_v23 = vpop.f32.mrb[12].mxu1 }
 0x1f7   :  { %v603_v24 = vadd.f32 %v602_v23, %v506_v17  ;;  %v604_v25 = vpop.f32.mrb[13].mxu1 }
 0x1f8   :  { %v605_v26 = vadd.f32 %v604_v25, %v510_v18 }
 0x1f9   :  { %615 = vst [vmem:[#allocation2 + $0x10] sm:$0xff] %v603_v24 }
 0x1fa   :  { %616 = vst [vmem:[#allocation2 + $0x18] sm:$0xff] %v605_v26  ;;  %v608_v27 = vpop.f32.mrb[14].mxu1 }
 0x1fb   :  { %v609_v28 = vadd.f32 %v608_v27, %v506_v17  ;;  %v610_v29 = vpop.f32.mrb[15].mxu1 }
 0x1fc   :  { %v611_v30 = vadd.f32 %v610_v29, %v510_v18 }
 0x1fd   :  { %617 = vst [vmem:[#allocation2 + $0x20] sm:$0xff] %v609_v28 }
 0x1fe   :  { %618 = vst [vmem:[#allocation2 + $0x28] sm:$0xff] %v611_v30 }
 0x1ff   :  { %951 = shalt.err (!%p948_p4)
}
 0x200   :  { %s952_s28 = scalar_lea.hbm %s1483_s5, 768 }
 0x201   :  { %p953_p5 = scmp.ne.s32.totalorder %s1483_s5, %s952_s28  ;;  %p956_p6 = scmp.lt.u32.totalorder %s952_s28, %s1483_s5 }
 0x203   :  { %p958_p7 = pnand %p956_p6, %p953_p5 }
 0x205   :  { %961 = shalt.err (!%p958_p7)
}
 0x206   :  { %s966_s1 = smov 256   ;;  %s967_s8 = smov 16  }
 0x207   :  { %630 = dma.vmem_to_hbm [thread:$0]  %s625_s25, 768, %s1483_s5, [#allocation3], %s966_s1, %s966_s1, %s967_s8  }
 0x208   :  { %962 = dma.done.wait [#allocation3], 768  }
 0x209   :  { %963 = vsyncadd [#allocation3], 4294966528 }
 0x20a   :  { %634 = vsyncpa [#allocation3], 1 }

</bundles_post_ra>
